<compile_context>
chip_gen: v7x
topology: tpu7x:2x2x1
jax: 0.10.0
libtpu: 0.0.40
codegen_flags: <defaults>
</compile_context>

<pallas_src>
import functools

import numpy as np
import jax
import jax.numpy as jnp
from jax.experimental import pallas as pl
from jax.experimental.pallas import tpu as pltpu


# --------------------------------------------------------------------------------------
# Kernel 1: global-average-pool(f) over spatial + fc1/relu/fc2/sigmoid  ->  channel gate
# --------------------------------------------------------------------------------------
def _gate_kernel(f_ref, w1_ref, w2_ref, gate_ref, acc_ref, *, m_total, tile_m, needs_mask):
    m = pl.program_id(1)

    @pl.when(m == 0)
    def _init():
        acc_ref[...] = jnp.zeros_like(acc_ref)

    fv = f_ref[...].astype(jnp.float32)                                   # (F_c, TM)
    if needs_mask:  # static: only emitted when M is not a multiple of TM
        col = m * tile_m + jax.lax.broadcasted_iota(jnp.int32, (1, tile_m), 1)
        fv = jnp.where(col < m_total, fv, 0.0)
    acc_ref[...] += jnp.sum(fv, axis=1, keepdims=True)                    # (F_c, 1)

    @pl.when(m == pl.num_programs(1) - 1)
    def _finalize():
        pooled = acc_ref[...] * jnp.float32(1.0 / m_total)                # (F_c, 1)
        # fc1 + relu: contract over F_c (sublanes)  ->  (1, F_mid_p)
        h = jnp.maximum(
            jnp.sum(w1_ref[...] * pooled, axis=0, keepdims=True), 0.0)
        # fc2: contract over F_mid (lanes)          ->  (F_de, 1)
        g = jnp.sum(w2_ref[...] * h, axis=1, keepdims=True)
        gate_ref[...] = jax.nn.sigmoid(g).astype(gate_ref.dtype)


# --------------------------------------------------------------------------------------
# Kernel 2: spatial SE gate + apply channel & spatial gates + concat
# --------------------------------------------------------------------------------------
def _apply_kernel(gate_ref, x_ref, wspa_ref, out_ref, *, f_de, concat):
    x = x_ref[...].astype(jnp.float32)                                    # (F_de, TM)
    spa = jax.nn.sigmoid(
        jnp.sum(x * wspa_ref[...], axis=0, keepdims=True))                # (1, TM)
    chn_se = x * gate_ref[...]                                            # (F_de,1) bcast
    spa_se = x * spa                                                      # (1,TM)  bcast
    if concat:
        out_ref[0:f_de, :] = chn_se.astype(out_ref.dtype)
        out_ref[f_de:2 * f_de, :] = spa_se.astype(out_ref.dtype)
    else:
        out_ref[...] = (chn_se + spa_se).astype(out_ref.dtype)


def _choose_tile_m(m, cap=2048):
    """Spatial (lane) tile: full M if small, else largest multiple-of-128 divisor <= cap."""
    if m <= cap:
        return m
    for t in range(cap, 127, -128):
        if m % t == 0:
            return t
    return cap   # ragged last tile; gate kernel masks it, output writeback is clipped


def attention_block(f_nchw, x_nchw, w_fc1, w_fc2, w_spa, concat=True):
    """
    f_nchw : (N, F_c, H, W)
    x_nchw : (N, F_de, H, W)
    w_fc1  : (F_mid, F_c, 1, 1)   PyTorch Conv2d weight, F_mid = F_c // reduction
    w_fc2  : (F_de, F_mid, 1, 1)
    w_spa  : (1, F_de, 1, 1)
    returns (N, 2*F_de, H, W) if concat else (N, F_de, H, W)
    """
    N, F_c, H, W = f_nchw.shape
    _, F_de, _, _ = x_nchw.shape
    F_mid = w_fc1.shape[0]
    M = H * W

    # Native NCHW viewed as (N, C, M): pure reshapes, zero extra HBM traffic.
    f_ncm = f_nchw.reshape(N, F_c, M)
    x_ncm = x_nchw.reshape(N, F_de, M)

    # Weight prep (hoisted out of the kernels, single cast). Hidden dim padded to >=8.
    F_mid_p = max(8, -(-F_mid // 8) * 8)
    # fc1: contraction over F_c happens along sublanes -> store as (F_c, F_mid_p).
    w1 = jnp.transpose(w_fc1[:, :, 0, 0], (1, 0)).astype(jnp.float32)     # (F_c, F_mid)
    w1 = jnp.pad(w1, ((0, 0), (0, F_mid_p - F_mid)))                      # (F_c, F_mid_p)
    # fc2: contraction over F_mid happens along lanes -> store as (F_de, F_mid_p).
    w2 = jnp.pad(w_fc2[:, :, 0, 0].astype(jnp.float32),
                 ((0, 0), (0, F_mid_p - F_mid)))                          # (F_de, F_mid_p)
    # spatial 1x1 conv weight: contraction over F_de along sublanes -> (F_de, 1).
    wspa = jnp.transpose(w_spa[:, :, 0, 0], (1, 0)).astype(jnp.float32)   # (F_de, 1)

    TM = _choose_tile_m(M)
    grid_m = pl.cdiv(M, TM)

    # ---- Kernel 1: channel gate ------------------------------------------------------
    gate = pl.pallas_call(
        functools.partial(_gate_kernel, m_total=M, tile_m=TM,
                          needs_mask=(M % TM != 0)),
        out_shape=jax.ShapeDtypeStruct((N, F_de, 1), jnp.float32),
        grid_spec=pltpu.PrefetchScalarGridSpec(
            num_scalar_prefetch=0,
            grid=(N, grid_m),
            in_specs=[
                pl.BlockSpec((None, F_c, TM), lambda n, m: (n, 0, m)),
                pl.BlockSpec((F_c, F_mid_p), lambda n, m: (0, 0)),
                pl.BlockSpec((F_de, F_mid_p), lambda n, m: (0, 0)),
            ],
            out_specs=pl.BlockSpec((None, F_de, 1), lambda n, m: (n, 0, 0)),
            scratch_shapes=[pltpu.VMEM((F_c, 1), jnp.float32)],
        ),
        compiler_params=pltpu.CompilerParams(
            dimension_semantics=("parallel", "arbitrary")),
    )(f_ncm, w1, w2)

    # ---- Kernel 2: spatial gate + apply + concat --------------------------------------
    C_out = 2 * F_de if concat else F_de
    out_ncm = pl.pallas_call(
        functools.partial(_apply_kernel, f_de=F_de, concat=concat),
        out_shape=jax.ShapeDtypeStruct((N, C_out, M), x_nchw.dtype),
        grid_spec=pltpu.PrefetchScalarGridSpec(
            num_scalar_prefetch=0,
            grid=(N, grid_m),
            in_specs=[
                pl.BlockSpec((None, F_de, 1), lambda n, m: (n, 0, 0)),
                pl.BlockSpec((None, F_de, TM), lambda n, m: (n, 0, m)),
                pl.BlockSpec((F_de, 1), lambda n, m: (0, 0)),
            ],
            out_specs=pl.BlockSpec((None, C_out, TM), lambda n, m: (n, 0, m)),
        ),
        compiler_params=pltpu.CompilerParams(
            dimension_semantics=("parallel", "parallel")),
    )(gate, x_ncm, wspa)

    # Free reshape back to NCHW — no transpose needed (matches the PyTorch interface).
    return out_ncm.reshape(N, C_out, H, W)


# --------------------------------------------------------------------------------------
# Pure-JAX reference matching the PyTorch forward exactly.
# --------------------------------------------------------------------------------------
def _reference(f, x, w_fc1, w_fc2, w_spa, concat=True):
    pooled = jnp.mean(f, axis=(2, 3), keepdims=True)                       # (N,F_c,1,1)
    h = jnp.maximum(jnp.einsum('nchw,oc->nohw', pooled, w_fc1[:, :, 0, 0]), 0.0)
    g = jax.nn.sigmoid(jnp.einsum('nchw,oc->nohw', h, w_fc2[:, :, 0, 0]))
    chn_se = g * x
    spa = jax.nn.sigmoid(jnp.einsum('nchw,oc->nohw', x, w_spa[:, :, 0, 0]))
    spa_se = x * spa
    return jnp.concatenate([chn_se, spa_se], axis=1) if concat else chn_se + spa_se


if __name__ == "__main__":
    key = jax.random.PRNGKey(0)
    k_f, k_x, k1, k2, k3 = jax.random.split(key, 5)

    # Small shapes consistent with the module (reduction=16 needs F_c >= 16).
    N, F_c, F_de, reduction, H, W = 2, 32, 16, 16, 16, 16
    F_mid = F_c // reduction                                               # = 2

    f = jax.random.normal(k_f, (N, F_c, H, W), jnp.float32)
    x = jax.random.normal(k_x, (N, F_de, H, W), jnp.float32)

    def _conv_init(k, shape):
        fan_in = shape[1] * shape[2] * shape[3]
        b = 1.0 / np.sqrt(fan_in)
        return jax.random.uniform(k, shape, jnp.float32, -b, b)

    w_fc1 = _conv_init(k1, (F_mid, F_c, 1, 1))
    w_fc2 = _conv_init(k2, (F_de, F_mid, 1, 1))
    w_spa = _conv_init(k3, (1, F_de, 1, 1))

    # concat=True path
    out = attention_block(f, x, w_fc1, w_fc2, w_spa, concat=True)
    out = jax.block_until_ready(out)
    assert out.shape == (N, 2 * F_de, H, W), out.shape
    ref = _reference(f, x, w_fc1, w_fc2, w_spa, concat=True)
    np.testing.assert_allclose(np.asarray(out), np.asarray(ref), rtol=1e-4, atol=1e-5)

    # concat=False path
    out2 = attention_block(f, x, w_fc1, w_fc2, w_spa, concat=False)
    out2 = jax.block_until_ready(out2)
    assert out2.shape == (N, F_de, H, W), out2.shape
    ref2 = _reference(f, x, w_fc1, w_fc2, w_spa, concat=False)
    np.testing.assert_allclose(np.asarray(out2), np.asarray(ref2), rtol=1e-4, atol=1e-5)

    print("KERNEL_OK")
</pallas_src>

<mosaic_0001>
module attributes {stable_mosaic.version = 11 : i64} {
  func.func @_gate_kernel(%arg0: i32, %arg1: i32, %arg2: memref<1x32x256xf32, #tpu.memory_space<vmem>>, %arg3: memref<32x8xf32, #tpu.memory_space<vmem>>, %arg4: memref<16x8xf32, #tpu.memory_space<vmem>>, %arg5: memref<1x16x1xf32, #tpu.memory_space<vmem>>, %arg6: memref<32x1xf32, #tpu.memory_space<vmem>>) attributes {dimension_semantics = [#tpu.dimension_semantics<parallel>, #tpu.dimension_semantics<arbitrary>], iteration_bounds = array<i64: 2, 1>, scalar_prefetch = 0 : i64, scratch_operands = 1 : i64, tpu.core_type = #tpu.core_type<tc>, window_params = [{transform_indices = @transform_0, window_bounds = array<i64: 1, 32, 256>}, {pipeline_mode = #tpu.pipeline_mode<synchronous>, transform_indices = @transform_1, window_bounds = array<i64: 32, 8>}, {pipeline_mode = #tpu.pipeline_mode<synchronous>, transform_indices = @transform_2, window_bounds = array<i64: 16, 8>}, {transform_indices = @transform_3, window_bounds = array<i64: 1, 16, 1>}]} {
    %c0_i32 = arith.constant 0 : i32
    %0 = arith.cmpi eq, %arg1, %c0_i32 : i32
    %1 = arith.extui %0 : i1 to i32
    %c0_i32_0 = arith.constant 0 : i32
    %2 = arith.cmpi ne, %1, %c0_i32_0 : i32
    scf.if %2 {
      %cst_9 = arith.constant 0.000000e+00 : f32
      %13 = vector.broadcast %cst_9 : f32 to vector<32x1xf32>
      %c0_10 = arith.constant 0 : index
      %c0_11 = arith.constant 0 : index
      %14 = vector.load %arg6[%c0_10, %c0_11] : memref<32x1xf32, #tpu.memory_space<vmem>>, vector<32x1xf32>
      tpu.vector_store %arg6[%c0_10, %c0_11], %13 {strides = array<i32>} : memref<32x1xf32, #tpu.memory_space<vmem>>, vector<32x1xf32>,
    } else {
    }
    %c0 = arith.constant 0 : index
    %c0_1 = arith.constant 0 : index
    %c0_2 = arith.constant 0 : index
    %3 = vector.load %arg2[%c0, %c0_1, %c0_2] : memref<1x32x256xf32, #tpu.memory_space<vmem>>, vector<1x32x256xf32>
    %4 = vector.shape_cast %3 : vector<1x32x256xf32> to vector<32x256xf32>
    %c0_3 = arith.constant 0 : index
    %c0_4 = arith.constant 0 : index
    %5 = vector.load %arg6[%c0_3, %c0_4] : memref<32x1xf32, #tpu.memory_space<vmem>>, vector<32x1xf32>
    %cst = arith.constant dense<0.000000e+00> : vector<32xf32>
    %6 = vector.multi_reduction <add>, %4, %cst [1] : vector<32x256xf32> to vector<32xf32>
    %7 = vector.shape_cast %6 : vector<32xf32> to vector<32x1xf32>
    %8 = arith.addf %5, %7 : vector<32x1xf32>
    %c0_5 = arith.constant 0 : index
    %c0_6 = arith.constant 0 : index
    %9 = vector.load %arg6[%c0_5, %c0_6] : memref<32x1xf32, #tpu.memory_space<vmem>>, vector<32x1xf32>
    tpu.vector_store %arg6[%c0_5, %c0_6], %8 {strides = array<i32>} : memref<32x1xf32, #tpu.memory_space<vmem>>, vector<32x1xf32>,
    %c0_i32_7 = arith.constant 0 : i32
    %10 = arith.cmpi eq, %arg1, %c0_i32_7 : i32
    %11 = arith.extui %10 : i1 to i32
    %c0_i32_8 = arith.constant 0 : i32
    %12 = arith.cmpi ne, %11, %c0_i32_8 : i32
    scf.if %12 {
      %c0_9 = arith.constant 0 : index
      %c0_10 = arith.constant 0 : index
      %13 = vector.load %arg6[%c0_9, %c0_10] : memref<32x1xf32, #tpu.memory_space<vmem>>, vector<32x1xf32>
      %cst_11 = arith.constant 3.906250e-03 : f32
      %14 = vector.broadcast %cst_11 : f32 to vector<32x1xf32>
      %15 = arith.mulf %13, %14 : vector<32x1xf32>
      %c0_12 = arith.constant 0 : index
      %c0_13 = arith.constant 0 : index
      %16 = vector.load %arg3[%c0_12, %c0_13] : memref<32x8xf32, #tpu.memory_space<vmem>>, vector<32x8xf32>
      %17 = vector.broadcast %15 : vector<32x1xf32> to vector<32x8xf32>
      %18 = arith.mulf %16, %17 : vector<32x8xf32>
      %cst_14 = arith.constant dense<0.000000e+00> : vector<8xf32>
      %19 = vector.multi_reduction <add>, %18, %cst_14 [0] : vector<32x8xf32> to vector<8xf32>
      %20 = vector.shape_cast %19 : vector<8xf32> to vector<1x8xf32>
      %cst_15 = arith.constant 0.000000e+00 : f32
      %21 = vector.broadcast %cst_15 : f32 to vector<1x8xf32>
      %22 = arith.maximumf %20, %21 : vector<1x8xf32>
      %c0_16 = arith.constant 0 : index
      %c0_17 = arith.constant 0 : index
      %23 = vector.load %arg4[%c0_16, %c0_17] : memref<16x8xf32, #tpu.memory_space<vmem>>, vector<16x8xf32>
      %24 = vector.broadcast %22 : vector<1x8xf32> to vector<16x8xf32>
      %25 = arith.mulf %23, %24 : vector<16x8xf32>
      %cst_18 = arith.constant dense<0.000000e+00> : vector<16xf32>
      %26 = vector.multi_reduction <add>, %25, %cst_18 [1] : vector<16x8xf32> to vector<16xf32>
      %27 = vector.shape_cast %26 : vector<16xf32> to vector<16x1xf32>
      %28 = arith.negf %27 : vector<16x1xf32>
      %29 = math.exp %28 : vector<16x1xf32>
      %cst_19 = arith.constant 1.000000e+00 : f32
      %30 = vector.broadcast %cst_19 : f32 to vector<16x1xf32>
      %31 = arith.addf %30, %29 : vector<16x1xf32>
      %32 = arith.divf %30, %31 : vector<16x1xf32>
      %c0_20 = arith.constant 0 : index
      %c0_21 = arith.constant 0 : index
      %c0_22 = arith.constant 0 : index
      %33 = vector.load %arg5[%c0_20, %c0_21, %c0_22] : memref<1x16x1xf32, #tpu.memory_space<vmem>>, vector<1x16x1xf32>
      %34 = vector.shape_cast %33 : vector<1x16x1xf32> to vector<16x1xf32>
      %35 = vector.shape_cast %32 : vector<16x1xf32> to vector<1x16x1xf32>
      tpu.vector_store %arg5[%c0_20, %c0_21, %c0_22], %35 {strides = array<i32>} : memref<1x16x1xf32, #tpu.memory_space<vmem>>, vector<1x16x1xf32>,
    } else {
    }
    return
  }
  func.func @transform_0(%arg0: i32, %arg1: i32) -> (i32, i32, i32) {
    %c0_i32 = arith.constant 0 : i32
    %c0_i32_0 = arith.constant 0 : i32
    return %arg0, %c0_i32, %arg1 : i32, i32, i32
  }
  func.func @transform_1(%arg0: i32, %arg1: i32) -> (i32, i32) {
    %c0_i32 = arith.constant 0 : i32
    %c0_i32_0 = arith.constant 0 : i32
    %c0_i32_1 = arith.constant 0 : i32
    return %c0_i32, %c0_i32_0 : i32, i32
  }
  func.func @transform_2(%arg0: i32, %arg1: i32) -> (i32, i32) {
    %c0_i32 = arith.constant 0 : i32
    %c0_i32_0 = arith.constant 0 : i32
    %c0_i32_1 = arith.constant 0 : i32
    return %c0_i32, %c0_i32_0 : i32, i32
  }
  func.func @transform_3(%arg0: i32, %arg1: i32) -> (i32, i32, i32) {
    %c0_i32 = arith.constant 0 : i32
    %c0_i32_0 = arith.constant 0 : i32
    %c0_i32_1 = arith.constant 0 : i32
    return %arg0, %c0_i32, %c0_i32_0 : i32, i32, i32
  }
}

</mosaic_0001>

<bundles_post_ra>
// kernel: tpu_custom_call.1
= control target key start
LH: loop header
LB: loop body
LE: loop exit
PB: predicated region body
PF: predicated region fallthrough
CT: control target
= control target key end

     0   :  { %8 = vsyncpa [#allocation4], 0  ;;  %s757_s0 = inlined_call_operand.hbm [shape: f32[2,32,256], index: 0, kind: input, shape index: {}]   ;;  %s758_s1 = inlined_call_operand.vmem [shape: f32[32,8], index: 1, kind: input, shape index: {}]   ;;  %s759_s2 = inlined_call_operand.vmem [shape: f32[16,8], index: 2, kind: input, shape index: {}]   ;;  %s760_s3 = inlined_call_operand.vmem [shape: f32[2,16,1], index: 3, kind: output, shape index: {}]  }
   0x1   :  { %10 = vsyncpa [#allocation4 + $0x1], 0  ;;  %s599_s12 = smov 0   ;;  %s601_s13 = smov 0  }
   0x2   :  { %s603_s14 = smov 0   ;;  %s605_s15 = smov 0  }
   0x3   :  { %s607_s16 = smov 0   ;;  %s609_s17 = smov 0  }
   0x4 LB: > { %s406_s18 = sadd.s32 4294967295, %s572_s17   ;;  %s28_s19 = sadd.s32 1, %s568_s16  ;;  %s572_s17 = sphi %s609_s17, %s16_s17   ;;  %s568_s16 = sphi %s607_s16, %s768_s16   ;;  %s564_s15 = sphi %s605_s15, %s767_s15   ;;  %s560_s14 = sphi %s603_s14, %s766_s14   ;;  %s556_s13 = sphi %s601_s13, %s765_s13   ;;  %s552_s12 = sphi %s599_s12, %s764_s12  }
   0x5   : > { %p30_p0 = scmp.ge.s32.totalorder %s28_s19, 2  ;;  %s37_s20 = sadd.s32 1, %s560_s14 }
   0x6   : > { %p44_p1 = scmp.ne.s32.totalorder %s560_s14, %s556_s13  ;;  %p45_p2 = scmp.eq.s32.totalorder %s572_s17, 0 }
   0x7   : > { %s770_s19 = smov (%p30_p0, %s28_s19), 0  ;;  %p50_p4 = scmp.ne.s32.totalorder %s556_s13, %s552_s12 }
   0x8   : > { %p635_p3 = por %p45_p2, %p44_p1  ;;  %s32_s22 = ssub.s32 %s568_s16, %s770_s19 }
   0x9   : > { %p51_p5 = scmp.eq.s32.totalorder %s406_s18, 0  ;;  %p35_p6 = scmp.eq.s32.totalorder %s32_s22, 0 }
   0xa   : > { %p429_p8 = scmp.lt.s32.totalorder %s572_s17, 2  ;;  %s148_s25 = sand.u32 1, %s560_s14  }
   0xb   : > { %p642_p7 = por %p51_p5, %p50_p4  ;;  %s421_s26 = sshll.u32 %s568_s16, 10 }
   0xc   : > { %s648_s24 = scalar_select %p35_p6, %s560_s14, %s37_s20  }
   0xd   : > { %s410_s27 = sshll.u32 %s148_s25, 6  ;;  %s655_s30 = scalar_lea.hbm %s757_s0, %s421_s26 }
   0xe   : > { %s152_s4 = scalar_lea.vmem [#allocation3], %s410_s27  ;;  %p659_p9 = pnand %p429_p8, %p635_p3 }
   0xf   : > { %s161_s5 = sshll.u32 %s152_s4, 4  ;;  %s665_s7 = scalar_lea.sflag [#allocation4], %s148_s25  ;;  %s663_s5 = int_to_ptr.vmem [resolvable:$true] %s161_s5 }
  0x10   : > { %s492_s8 = scalar_lea.hbm %s655_s30, 1024  ;;  %p494_p11 = pneg %p659_p9 }
  0x11   : > { %p493_p10 = scmp.ne.s32.totalorder %s655_s30, %s492_s8  ;;  %s497_s11 = scalar_lea.hbm %s757_s0, 2048 }
  0x12   : > { %p498_p0 = scmp.lt.u32.totalorder %s655_s30, %s757_s0  ;;  %p499_p1 = scmp.lt.u32.totalorder %s497_s11, %s492_s8 }
  0x13   : > { %p495_p12 = pnand %p494_p11, %p493_p10  ;;  %p501_p3 = scmp.lt.u32.totalorder %s492_s8, %s655_s30 }
  0x14   : > { %p500_p2 = por %p499_p1, %p498_p0 }
  0x15   : > { %p496_p13 = pneg %p495_p12 }
  0x16   : > { %p502_p4 = por %p501_p3, %p500_p2 }
  0x18   : > { %p503_p5 = pnand %p502_p4, %p496_p13 }
  0x1a   : > { %506 = shalt.err (!%p503_p5)
}
  0x1b   : > { %s507_s20 = scalar_lea.vmem %s663_s5, 1024  ;;  %s574_s21 = smov [#allocation3]  }
  0x1c   : > { %p508_p6 = scmp.ne.s32.totalorder %s663_s5, %s507_s20  ;;  %s512_s22 = sshll.u32 %s574_s21, 4  ;;  %s513_s22 = int_to_ptr.vmem [resolvable:$false] %s512_s22 }
  0x1d   : > { %s514_s25 = scalar_lea.vmem %s513_s22, 2048  ;;  %p515_p12 = scmp.lt.s32.totalorder %s663_s5, %s513_s22 }
  0x1e   : > { %p510_p8 = pnand %p508_p6, %p494_p11  ;;  %p516_p0 = scmp.lt.s32.totalorder %s514_s25, %s507_s20 }
  0x20   : > { %p511_p10 = pneg %p510_p8  ;;  %p517_p1 = por %p516_p0, %p515_p12 }
  0x22   : > { %p518_p2 = pnand %p517_p1, %p511_p10 }
  0x24   : > { %521 = shalt.err (!%p518_p2)
}
  0x25   : > { %s575_s26 = smov 256   ;;  %s576_s27 = smov 16  }
  0x26   : > { %428 = dma.hbm_to_vmem [thread:$0]  (!%p659_p9), %s655_s30, 1024, %s663_s5, %s665_s7, %s575_s26, %s575_s26, %s576_s27  }
  0x27   : > { %p413_p11 = scmp.ge.s32.totalorder %s572_s17, 1  ;;  %p169_p13 = scmp.lt.s32.totalorder %s572_s17, 3 }
  0x29   : > { %p170_p3 = pnand %p413_p11, %p169_p13 }
  0x2a   : > { %s175_s28 = sand.u32 (!%p170_p3), 1, %s556_s13  }
  0x2b   : > { %173 = sbr.rel (%p170_p3) target bundleno = 540 (0x21c), region = 32  ;;  %s414_s29 = sshll.u32 (!%p170_p3), %s175_s28, 6 }
  0x2c   : > { %s176_s4 = scalar_lea.sflag (!%p170_p3), [#allocation4], %s175_s28  ;;  %s179_s8 = scalar_lea.vmem (!%p170_p3), [#allocation3], %s414_s29 }
  0x32   : > { %547 = dma.done.wait (%p642_p7), %s176_s4, 1024  }
  0x33   : > { %549 = vsyncadd (%p642_p7), %s176_s4, 4294966272  ;;  %vm212_vm0 = vcmask 7168   ;;  %v577_v0 = vmov 0.0   ;;  %v217_v1 = vld [vmem:[%s179_s8] sm:$0xff]  ;;  %v218_v2 = vld [vmem:[%s179_s8 + $0x8] sm:$0xff]  ;;  %v578_v13 = vmov 0  }
  0x34   : > { %213 = vst.msk [vmem:[#allocation2] sm:$0xff] %vm212_vm0, %v577_v0  ;;  %214 = vst.msk [vmem:[#allocation2 + $0x8] sm:$0xff] %vm212_vm0, %v577_v0  ;;  %v219_v3 = vld [vmem:[%s179_s8 + $0x10] sm:$0xff]  ;;  %v229_v4 = vadd.f32 %v218_v2, %v217_v1  ;;  %v220_v5 = vld [vmem:[%s179_s8 + $0x18] sm:$0xff]  ;;  %482 = vset.pattern.permute.xlu0 %v578_v13  ;;  %483 = vset.pattern.permute.xlu1 %v578_v13  ;;  %vm289_vm1 = vcmask 64512   ;;  %p203_p7 = scmp.lt.s32.totalorder %s564_s15, 1 }
  0x35   : > { %215 = vst.msk [vmem:[#allocation2 + $0x10] sm:$0xff] %vm212_vm0, %v577_v0  ;;  %216 = vst.msk [vmem:[#allocation2 + $0x18] sm:$0xff] %vm212_vm0, %v577_v0  ;;  %v221_v6 = vld [vmem:[%s179_s8 + $0x20] sm:$0xff]  ;;  %v222_v7 = vld [vmem:[%s179_s8 + $0x28] sm:$0xff]  ;;  %v232_v11 = vadd.f32 %v220_v5, %v219_v3 }
  0x36   : > { %v235_v8 = vadd.f32 %v222_v7, %v221_v6  ;;  %v223_v9 = vld [vmem:[%s179_s8 + $0x30] sm:$0xff]  ;;  %v224_v10 = vld [vmem:[%s179_s8 + $0x38] sm:$0xff]  ;;  %230 = vadd.xlane.f32.xlu0 %v229_v4  ;;  %v262_v34 = vld [vmem:[%s758_s1 + $0x8] sm:$0xff]  ;;  %s772_s15 = smov (!%p203_p7, %s564_s15), 1 }
  0x37   : > { %v238_v12 = vadd.f32 %v224_v10, %v223_v9  ;;  %v261_v35 = vld [vmem:[%s758_s1] sm:$0xff]  ;;  %v263_v39 = vld [vmem:[%s758_s1 + $0x10] sm:$0xff]  ;;  %v264_v44 = vld [vmem:[%s758_s1 + $0x18] sm:$0xff]  ;;  %s422_s22 = sshll.u32 %s772_s15, 4 }
  0x38   : > { %236 = vadd.xlane.f32.xlu1 %v235_v8  ;;  %v305_v59 = vld [vmem:[%s759_s2 + $0x8] sm:$0xff]  ;;  %v304_v60 = vld [vmem:[%s759_s2] sm:$0xff]  ;;  %s207_s27 = scalar_lea.vmem %s760_s3, %s422_s22 }
  0x3a   : > { %233 = vadd.xlane.f32.xlu0 %v232_v11 }
  0x3b   : > { %v225_v14 = vld [vmem:[#allocation2] sm:$0xff]  ;;  %v226_v19 = vld [vmem:[#allocation2 + $0x8] sm:$0xff] }
  0x3c   : > { %239 = vadd.xlane.f32.xlu1 %v238_v12  ;;  %v227_v15 = vld [vmem:[#allocation2 + $0x10] sm:$0xff]  ;;  %v228_v21 = vld [vmem:[#allocation2 + $0x18] sm:$0xff] }
  0xc3   : > { %v231_v16 = vpop.xlane.xlu0 %230 }
  0xc4   : > { %v241_v17 = vadd.f32 %v231_v16, %v225_v14 }
  0xc5   : > { %v237_v18 = vpop.xlane.xlu1 %236 }
  0xc6   : > { %v243_v20 = vadd.f32 %v237_v18, %v227_v15  ;;  %246 = vst.msk [vmem:[#allocation2] sm:$0xff] %vm212_vm0, %v241_v17 }
  0xc7   : > { %v234_v22 = vpop.xlane.xlu0 %233 }
  0xc8   : > { %248 = vst.msk [vmem:[#allocation2 + $0x10] sm:$0xff] %vm212_vm0, %v243_v20  ;;  %v242_v23 = vadd.f32 %v234_v22, %v226_v19 }
  0xc9   : > { %v240_v24 = vpop.xlane.xlu1 %239 }
  0xca   : > { %v244_v25 = vadd.f32 %v240_v24, %v228_v21  ;;  %247 = vst.msk [vmem:[#allocation2 + $0x8] sm:$0xff] %vm212_vm0, %v242_v23 }
  0xcc   : > { %249 = vst.msk [vmem:[#allocation2 + $0x18] sm:$0xff] %vm212_vm0, %v244_v25 }
  0xcd   : > { %v253_v26 = vld [vmem:[#allocation2] sm:$0xff] }
  0xce   : > { %v257_v27 = vmul.f32 0.00390625, %v253_v26 }
  0xcf   : > { %v255_v29 = vld [vmem:[#allocation2 + $0x10] sm:$0xff] }
  0xd0   : > { %267 = vperm.xlu0 %482, %v257_v27   ;;  %v259_v31 = vmul.f32 0.00390625, %v255_v29 }
  0xd1   : > { %v254_v28 = vld [vmem:[#allocation2 + $0x8] sm:$0xff] }
  0xd2   : > { %v258_v30 = vmul.f32 0.00390625, %v254_v28 }
  0xd3   : > { %v256_v32 = vld [vmem:[#allocation2 + $0x18] sm:$0xff] }
  0xd4   : > { %272 = vperm.xlu1 %483, %v258_v30   ;;  %v260_v33 = vmul.f32 0.00390625, %v256_v32 }
  0xd8   : > { %277 = vperm.xlu1 %483, %v259_v31  }
  0xdc   : > { %282 = vperm.xlu1 %483, %v260_v33  }
 0x14f   : > { %v268_v36 = vpop.permute.xlu0 %267 }
 0x150   : > { %v285_v40 = vmul.f32 %v268_v36, %v261_v35 }
 0x152   : > { %v290_v45 = vsel %vm289_vm1, %v285_v40, 0.0 }
 0x153   : > { %v273_v37 = vpop.permute.xlu1 %272 }
 0x154   : > { %v286_v38 = vmul.f32 %v273_v37, %v262_v34 }
 0x156   : > { %v291_v42 = vsel %vm289_vm1, %v286_v38, 0.0 }
 0x157   : > { %v278_v41 = vpop.permute.xlu1 %277  ;;  %v292_v47 = vadd.f32 %v291_v42, %v290_v45 }
 0x158   : > { %v287_v43 = vmul.f32 %v278_v41, %v263_v39 }
 0x15a   : > { %v293_v46 = vsel %vm289_vm1, %v287_v43, 0.0 }
 0x15b   : > { %v283_v48 = vpop.permute.xlu1 %282  ;;  %v294_v50 = vadd.f32 %v293_v46, %v292_v47 }
 0x15c   : > { %v288_v49 = vmul.f32 %v283_v48, %v264_v44 }
 0x15e   : > { %v295_v51 = vsel %vm289_vm1, %v288_v49, 0.0 }
 0x15f   : > { %v296_v52 = vadd.f32 %v295_v51, %v294_v50 }
 0x161   : > { %v297_v53 = vrot.slane %v296_v52, 4 }
 0x163   : > { %v298_v54 = vadd.f32 %v297_v53, %v296_v52 }
 0x165   : > { %v299_v55 = vrot.slane %v298_v54, 2 }
 0x167   : > { %v300_v56 = vadd.f32 %v299_v55, %v298_v54 }
 0x169   : > { %v301_v57 = vrot.slane %v300_v56, 1 }
 0x16b   : > { %v302_v58 = vadd.f32 %v301_v57, %v300_v56 }
 0x16d   : > { %v303_v61 = vmax.f32 %v302_v58, 0.0 }
 0x16f   : > { %v307_v62 = vmul.f32 %v305_v59, %v303_v61  ;;  %v306_v63 = vmul.f32 %v304_v60, %v303_v61 }
 0x171   : > { %v311_v0 = vsel %vm289_vm1, %v307_v62, 0.0  ;;  %v308_v1 = vsel %vm289_vm1, %v306_v63, 0.0 }
 0x172   : > { %312 = vadd.xlane.f32.xlu0 %v311_v0  ;;  %309 = vadd.xlane.f32.xlu1 %v308_v1 }
 0x1ff   : > { %v313_v2 = vpop.xlane.xlu0 %312  ;;  %v310_v3 = vpop.xlane.xlu1 %309 }
 0x200   : > { %v418_v4 = vmul.f32 -1.442695, %v313_v2  ;;  %v417_v5 = vmul.f32 -1.442695, %v310_v3 }
 0x202   : > { %484 = vpow2.f32 %v418_v4 }
 0x203   : > { %486 = vpow2.f32 %v417_v5 }
 0x20c   : > { %v485_v6 = vpop.eup %484 }
 0x20d   : > { %v487_v7 = vpop.eup %486  ;;  %v321_v8 = vadd.f32 1.0, %v485_v6 }
 0x20e   : > { %v320_v9 = vadd.f32 1.0, %v487_v7 }
 0x20f   : > { %488 = vrcp.f32 %v321_v8 }
 0x210   : > { %490 = vrcp.f32 %v320_v9 }
 0x219   : > { %v489_v10 = vpop.eup %488 }
 0x21a   : > { %v491_v11 = vpop.eup %490  ;;  %327 = vst.msk [vmem:[%s207_s27 + $0x8] sm:$0xff] %vm212_vm0, %v489_v10 }
 0x21b   : > { %326 = vst.msk [vmem:[%s207_s27] sm:$0xff] %vm212_vm0, %v491_v11 }
 0x21c PF: > { %s16_s17 = sadd.s32 1, %s572_s17   ;;  %s764_s12 = smov %s556_s13 }
 0x21d   : > { %p13_p9 = scmp.ge.s32.totalorder %s16_s17, 4   ;;  %s765_s13 = smov %s560_s14 }
 0x21e   : > { %s766_s14 = smov %s648_s24  ;;  %s767_s15 = smov %s568_s16 }
 0x21f   : > { %s768_s16 = smov %s770_s19  ;;  %15 = sbr.rel (!%p13_p9) target bundleno = 4 (0x4), region = 80 }
 0x226   :  { %349 = vsyncpa [#allocation4], 1 }
 0x227   :  { %351 = vsyncpa [#allocation4 + $0x1], 1 }

</bundles_post_ra>
